<compile_context>
chip_gen: v5e
topology: v5e:2x2
jax: 0.10.0
libtpu: 0.0.40
codegen_flags: <defaults>
</compile_context>

<pallas_src>
import functools

import numpy as np
import jax
import jax.numpy as jnp
from jax.experimental import pallas as pl
from jax.experimental.pallas import tpu as pltpu


# ----------------------------------------------------------------------------
# Filter-bank generation (glue, plain JAX): replicates torch.nn.functional
# affine_grid + grid_sample (bilinear, padding_mode='zeros', align_corners=False)
# ----------------------------------------------------------------------------
def rot_img(x, theta):
    """Rotate a stack of 2D images x: [N, C, H, W] by angle theta (radians)."""
    _, _, H, W = x.shape
    cos_t = np.float32(np.cos(theta))
    sin_t = np.float32(np.sin(theta))

    # affine_grid base grid (align_corners=False): pixel centers in [-1, 1]
    xs = (2.0 * jnp.arange(W, dtype=jnp.float32) + 1.0) / W - 1.0
    ys = (2.0 * jnp.arange(H, dtype=jnp.float32) + 1.0) / H - 1.0
    gy, gx = jnp.meshgrid(ys, xs, indexing="ij")            # [H, W]

    # grid = rot_mat @ [x, y, 1]^T  with rot_mat = [[cos, -sin, 0], [sin, cos, 0]]
    sx = cos_t * gx - sin_t * gy
    sy = sin_t * gx + cos_t * gy

    # grid_sample unnormalization (align_corners=False)
    ix = ((sx + 1.0) * W - 1.0) / 2.0
    iy = ((sy + 1.0) * H - 1.0) / 2.0

    ix0 = jnp.floor(ix)
    iy0 = jnp.floor(iy)
    wx1 = ix - ix0
    wx0 = 1.0 - wx1
    wy1 = iy - iy0
    wy0 = 1.0 - wy1

    def corner(iy_f, ix_f):
        valid = (ix_f >= 0) & (ix_f <= W - 1) & (iy_f >= 0) & (iy_f <= H - 1)
        ixc = jnp.clip(ix_f, 0, W - 1).astype(jnp.int32)
        iyc = jnp.clip(iy_f, 0, H - 1).astype(jnp.int32)
        vals = x[:, :, iyc, ixc]                             # [N, C, H, W]
        return jnp.where(valid[None, None], vals, 0.0)

    out = (corner(iy0, ix0) * (wy0 * wx0)[None, None]
           + corner(iy0, ix0 + 1.0) * (wy0 * wx1)[None, None]
           + corner(iy0 + 1.0, ix0) * (wy1 * wx0)[None, None]
           + corner(iy0 + 1.0, ix0 + 1.0) * (wy1 * wx1)[None, None])
    return out


def generate_filter_bank(weight, group_order):
    """weight: [nfb, O, Cin, K, K] -> filter bank [nfb, O, G, Cin, K, K]."""
    nfb, O, Cin, K, _ = weight.shape
    w = weight.reshape(nfb * O, Cin, K, K)
    bank = jnp.stack(
        [rot_img(w, -np.pi * 2.0 / group_order * i) for i in range(group_order)]
    )                                                        # [G, nfb*O, Cin, K, K]
    bank = jnp.transpose(bank, (1, 0, 2, 3, 4))              # [nfb*O, G, Cin, K, K]
    return bank.reshape(nfb, O, group_order, Cin, K, K)


def _make_conv_weight(weight, combination_weights, group_order):
    """Returns conv2d weight [O*G, Cin, K, K] (PyTorch OIHW)."""
    nfb, O, Cin, K, _ = weight.shape
    bank = generate_filter_bank(weight, group_order)         # [nfb, O, G, Cin, K, K]
    relaxed = jnp.einsum("na,noaikl->oaikl", combination_weights, bank)
    return relaxed.reshape(O * group_order, Cin, K, K)


def _round_up(x, m):
    return ((x + m - 1) // m) * m


# ----------------------------------------------------------------------------
# Pallas kernel: one lane-dense GEMM block (+ fused ReLU)
# ----------------------------------------------------------------------------
def _lifting_gemm_kernel(w_ref, p_ref, o_ref, *, apply_relu):
    # w_ref: [OG, CKK]  bf16  (grid-invariant, one contiguous 2-D weight matrix)
    # p_ref: [CKK, TM]  bf16  (im2col patches; TM multiple of 128 -> lane-dense)
    # o_ref: [OG, TM]   f32   (lane-dense block -> unmasked vector stores)
    acc = jnp.dot(w_ref[...], p_ref[...], preferred_element_type=jnp.float32)
    if apply_relu:
        acc = jnp.maximum(acc, 0.0)
    o_ref[...] = acc.astype(o_ref.dtype)


def relaxed_lifting_conv(x, weight, combination_weights, group_order,
                         activation=True, block_m=512):
    """Forward pass of Relaxed_LiftingConvolution.

    x: [N, Cin, H, W] (PyTorch NCHW).  Returns [N, Cout, G, W, H] (the exact
    data layout produced by the PyTorch `.view`).
    """
    N, Cin, H, W = x.shape
    nfb, O, _, K, _ = weight.shape
    G = group_order
    p = (K - 1) // 2
    Ho = H + 2 * p - K + 1
    Wo = W + 2 * p - K + 1
    OG = O * G
    CKK = Cin * K * K

    # Filter bank + relaxed combination (glue, tiny tensors). Single 2-D bf16
    # weight matrix instead of per-tap (Cin, OG) slabs.
    w_oihw = _make_conv_weight(weight, combination_weights, G)   # [O*G, Cin, K, K]
    w2d = w_oihw.reshape(OG, CKK).astype(jnp.bfloat16)           # [OG, Cin*K*K]

    # im2col in the wrapper: patches_t[r, m] = x_pad[n, c, h+kh, w+kw]
    #   r = c*K*K + kh*K + kw  (matches w2d column order)
    #   m = n*Ho*Wo + h*Wo + w (fused batch*spatial -> lane axis)
    x_pad = jnp.pad(x, ((0, 0), (0, 0), (p, p), (p, p)))
    taps = [x_pad[:, :, kh:kh + Ho, kw:kw + Wo]
            for kh in range(K) for kw in range(K)]               # each [N,Cin,Ho,Wo]
    patches = jnp.stack(taps, axis=2)                            # [N, Cin, K*K, Ho, Wo]
    patches = patches.reshape(N, CKK, Ho * Wo)
    patches = patches.transpose(1, 0, 2).reshape(CKK, N * Ho * Wo)
    patches = patches.astype(jnp.bfloat16)

    # Tile the fused batch*spatial dim; each TM block is independent (parallel),
    # so v7x's two TensorCores split the grid.  TM is a multiple of 128.
    M = N * Ho * Wo
    TM = min(block_m, _round_up(M, 128))
    M_pad = _round_up(M, TM)
    if M_pad != M:
        patches = jnp.pad(patches, ((0, 0), (0, M_pad - M)))

    # Working set per grid step (double-buffered): ~2*(CKK*TM*2 + OG*TM*4) bytes
    # plus the tiny weight — far below the 64 MiB v7x VMEM for these shapes.
    # For production Cin/OG, shrink block_m and/or add OG / CKK grid axes.
    kernel = functools.partial(_lifting_gemm_kernel, apply_relu=activation)

    out_t = pl.pallas_call(
        kernel,
        out_shape=jax.ShapeDtypeStruct((OG, M_pad), x.dtype),
        grid=(M_pad // TM,),
        in_specs=[
            pl.BlockSpec((OG, CKK), lambda i: (0, 0)),   # grid-invariant weight
            pl.BlockSpec((CKK, TM), lambda i: (0, i)),
        ],
        out_specs=pl.BlockSpec((OG, TM), lambda i: (0, i)),
        compiler_params=pltpu.CompilerParams(
            dimension_semantics=("parallel",)),
    )(w2d, patches)

    # [OG, N*Ho*Wo] -> contiguous NCHW [N, OG, Ho, Wo]
    out_nchw = out_t[:, :M].reshape(OG, N, Ho, Wo).transpose(1, 0, 2, 3)
    # PyTorch: x.view(N, O, G, x.shape[-1], x.shape[-2]) is a reinterpretation of
    # the contiguous NCHW buffer -> plain reshape here (same semantics).
    return out_nchw.reshape(N, O, G, Wo, Ho)


# TODO(synk): save_channel_magnitude_image (matplotlib PNG file I/O) and the
# batch_number / deepcopy bookkeeping are host-side side effects with no Pallas
# equivalent; they are intentionally omitted.


if __name__ == "__main__":
    # Module hyper-parameters (small, consistent with the reference module).
    in_channels, out_channels, kernel_size = 4, 4, 3
    group_order, num_filter_banks = 4, 2
    N, H, W = 2, 16, 16

    key = jax.random.PRNGKey(0)
    k_w, k_x = jax.random.split(key)

    # Deterministic parameter init mirroring __init__.
    stdv = float(np.sqrt(1.0 / (in_channels * kernel_size * kernel_size)))
    weight = jax.random.uniform(
        k_w,
        (num_filter_banks, out_channels, in_channels, kernel_size, kernel_size),
        dtype=jnp.float32, minval=-stdv, maxval=stdv)
    combination_weights = (jnp.ones((num_filter_banks, group_order),
                                    dtype=jnp.float32) / num_filter_banks)

    x = jax.random.normal(k_x, (N, in_channels, H, W), dtype=jnp.float32)

    out = relaxed_lifting_conv(x, weight, combination_weights, group_order,
                               activation=True)
    out = jax.block_until_ready(out)
    assert out.shape == (N, out_channels, group_order, W, H)

    # Reference: XLA conv on the SAME bf16-rounded operands with f32 accumulate,
    # so only accumulation-order noise separates it from the Pallas GEMM.
    p = (kernel_size - 1) // 2
    w_full = _make_conv_weight(weight, combination_weights, group_order)
    x_r = x.astype(jnp.bfloat16).astype(jnp.float32)
    w_r = w_full.astype(jnp.bfloat16).astype(jnp.float32)
    ref = jax.lax.conv_general_dilated(
        x_r, w_r, window_strides=(1, 1), padding=[(p, p), (p, p)],
        dimension_numbers=("NCHW", "OIHW", "NCHW"),
        precision=jax.lax.Precision.HIGHEST)
    ref = jnp.maximum(ref, 0.0).reshape(out.shape)
    np.testing.assert_allclose(np.asarray(out), np.asarray(ref),
                               atol=1e-2, rtol=1e-2)

    print("KERNEL_OK")
</pallas_src>

<mosaic_0001>
module attributes {stable_mosaic.version = 11 : i64} {
  func.func @_lifting_gemm_kernel(%arg0: i32, %arg1: memref<16x36xbf16, #tpu.memory_space<vmem>>, %arg2: memref<36x512xbf16, #tpu.memory_space<vmem>>, %arg3: memref<16x512xf32, #tpu.memory_space<vmem>>) attributes {dimension_semantics = [#tpu.dimension_semantics<parallel>], iteration_bounds = array<i64: 1>, scalar_prefetch = 0 : i64, scratch_operands = 0 : i64, tpu.core_type = #tpu.core_type<tc>, window_params = [{pipeline_mode = #tpu.pipeline_mode<synchronous>, transform_indices = @transform_0, window_bounds = array<i64: 16, 36>}, {transform_indices = @transform_1, window_bounds = array<i64: 36, 512>}, {transform_indices = @transform_2, window_bounds = array<i64: 16, 512>}]} {
    %c0 = arith.constant 0 : index
    %c0_0 = arith.constant 0 : index
    %0 = vector.load %arg1[%c0, %c0_0] : memref<16x36xbf16, #tpu.memory_space<vmem>>, vector<16x36xbf16>
    %c0_1 = arith.constant 0 : index
    %c0_2 = arith.constant 0 : index
    %1 = vector.load %arg2[%c0_1, %c0_2] : memref<36x512xbf16, #tpu.memory_space<vmem>>, vector<36x512xbf16>
    %cst = arith.constant dense<0.000000e+00> : vector<16x512xf32>
    %2 = tpu.matmul %0, %1, %cst {dimension_numbers = #tpu.dot_dimension_numbers<[1], [0], [0], [1], [0, 0, 1, 1], [], []>} : vector<16x36xbf16>, vector<36x512xbf16>, vector<16x512xf32> -> vector<16x512xf32>
    %cst_3 = arith.constant 0.000000e+00 : f32
    %3 = vector.broadcast %cst_3 : f32 to vector<16x512xf32>
    %4 = arith.maximumf %2, %3 : vector<16x512xf32>
    %c0_4 = arith.constant 0 : index
    %c0_5 = arith.constant 0 : index
    %5 = vector.load %arg3[%c0_4, %c0_5] : memref<16x512xf32, #tpu.memory_space<vmem>>, vector<16x512xf32>
    tpu.vector_store %arg3[%c0_4, %c0_5], %4 {strides = array<i32>} : memref<16x512xf32, #tpu.memory_space<vmem>>, vector<16x512xf32>,
    return
  }
  func.func @transform_0(%arg0: i32) -> (i32, i32) {
    %c0_i32 = arith.constant 0 : i32
    %c0_i32_0 = arith.constant 0 : i32
    %c0_i32_1 = arith.constant 0 : i32
    return %c0_i32, %c0_i32_0 : i32, i32
  }
  func.func @transform_1(%arg0: i32) -> (i32, i32) {
    %c0_i32 = arith.constant 0 : i32
    %c0_i32_0 = arith.constant 0 : i32
    return %c0_i32, %arg0 : i32, i32
  }
  func.func @transform_2(%arg0: i32) -> (i32, i32) {
    %c0_i32 = arith.constant 0 : i32
    %c0_i32_0 = arith.constant 0 : i32
    return %c0_i32, %arg0 : i32, i32
  }
}

</mosaic_0001>

<bundles_post_ra>
// kernel: tpu_custom_call.1
= control target key start
LH: loop header
LB: loop body
LE: loop exit
PB: predicated region body
PF: predicated region fallthrough
CT: control target
= control target key end

     0   :  { %7 = vsyncpa [#allocation3], 0  ;;  %s394_s0 = inlined_call_operand.hbm [shape: bf16[16,36], index: 0, kind: input, shape index: {}]   ;;  %s395_s1 = inlined_call_operand.hbm [shape: bf16[36,512], index: 1, kind: input, shape index: {}]   ;;  %s396_s2 = inlined_call_operand.hbm [shape: f32[16,512], index: 2, kind: output, shape index: {}]  }
   0x1   :  { %8 = vsyncpa [#allocation6], 0 }
   0x2   :  { %9 = vsyncpa [#allocation4], 0  ;;  %s14_s11 = sshll.u32 %s394_s0, 4  ;;  %s357_s12 = smov [#allocation2]   ;;  %s15_s11 = int_to_ptr.hbm [resolvable:$true] %s14_s11 }
   0x3   :  { %s16_s13 = sshll.u32 %s357_s12, 4  ;;  %s27_s16 = sshll.u32 %s395_s1, 4  ;;  %s17_s13 = int_to_ptr.vmem [resolvable:$true] %s16_s13  ;;  %s28_s16 = int_to_ptr.hbm [resolvable:$true] %s27_s16 }
   0x4   :  { %s358_s17 = smov 64   ;;  %s359_s18 = smov 4  }
   0x5   :  { %22 = dma.hbm_to_vmem [thread:$0]  %s15_s11, 128, %s17_s13, [#allocation3], %s358_s17, %s358_s17, %s359_s18  }
   0x6   :  { %s360_s19 = smov [#allocation5]   ;;  %s361_s21 = smov 256  }
   0x7   :  { %s29_s20 = sshll.u32 %s360_s19, 4  ;;  %s362_s22 = smov 16   ;;  %s30_s20 = int_to_ptr.vmem [resolvable:$true] %s29_s20 }
   0x8   :  { %35 = dma.hbm_to_vmem [thread:$0]  %s28_s16, 1280, %s30_s20, [#allocation6], %s361_s21, %s361_s21, %s362_s22  }
   0x9   :  { %351 = dma.done.wait [#allocation3], 128  }
   0xa   :  { %352 = vsyncadd [#allocation3], 4294967168 }
   0xb   :  { %353 = dma.done.wait [#allocation6], 1280  }
   0xc   :  { %354 = vsyncadd [#allocation6], 4294966016  ;;  %v55_v0 = vld [vmem:[#allocation5 + $0x40] sm:$0x33]  ;;  %v56_v1 = vld [vmem:[#allocation5 + $0x48] sm:$0x33] }
   0xd   :  { %v88_v2 = vunpack.c.l.b16 %v55_v0  ;;  %v89_v3 = vunpack.c.h.b16 %v55_v0  ;;  %v90_v4 = vunpack.c.l.b16 %v56_v1  ;;  %v91_v5 = vunpack.c.h.b16 %v56_v1  ;;  %v243_v6 = vld [vmem:[#allocation5 + $0x20] sm:$0xf]  ;;  %v268_v7 = vld [vmem:[#allocation5 + $0x2c] sm:$0xf0]  ;;  %v266_v12 = vld [vmem:[#allocation5 + $0x24] sm:$0xf] }
   0xe   :  { %vm116_vm0 = vcmask 1041408   ;;  %v245_v13 = vld [vmem:[#allocation5 + $0x30] sm:$0xf0]  ;;  %v251_v14 = vld [vmem:[#allocation5 + $0x28] sm:$0xf]  ;;  %v244_v22 = vor.u32 %v268_v7, %v243_v6  ;;  %v261_v38 = vld [vmem:[#allocation2] sm:$0xff] }
   0xf   :  { %v100_v8 = vpack.c.b16 %v88_v2, %v88_v2  ;;  %v101_v9 = vpack.c.b16 %v89_v3, %v89_v3  ;;  %v102_v10 = vpack.c.b16 %v90_v4, %v90_v4  ;;  %v103_v11 = vpack.c.b16 %v91_v5, %v91_v5  ;;  %v269_v15 = vld [vmem:[#allocation5 + $0x34] sm:$0xf0]  ;;  %v267_v16 = vld [vmem:[#allocation5 + $0x2c] sm:$0xf]  ;;  %v253_v17 = vld [vmem:[#allocation5 + $0x38] sm:$0xf0] }
  0x10   :  { %v248_v23 = vor.u32 %v266_v12, %v245_v13  ;;  %v227_v24 = vld [vmem:[#allocation5] sm:$0xf]  ;;  %v264_v25 = vld [vmem:[#allocation5 + $0xc] sm:$0xf0]  ;;  %v252_v26 = vor.u32 %v269_v15, %v251_v14  ;;  %v256_v27 = vor.u32 %v267_v16, %v253_v17  ;;  %v262_v28 = vld [vmem:[#allocation5 + $0x4] sm:$0xf] }
  0x11   :  { %v118_v18 = vsel %vm116_vm0, %v100_v8, 0  ;;  %v121_v19 = vsel %vm116_vm0, %v101_v9, 0  ;;  %v124_v20 = vsel %vm116_vm0, %v102_v10, 0  ;;  %v127_v21 = vsel %vm116_vm0, %v103_v11, 0  ;;  %v229_v29 = vld [vmem:[#allocation5 + $0x10] sm:$0xf0] }
  0x12   :  { %134 = vmatpush.bf16.msra.mxu0 %v118_v18  ;;  %148 = vmatpush.bf16.msra.mxu1 %v121_v19  ;;  %v235_v30 = vld [vmem:[#allocation5 + $0x8] sm:$0xf]  ;;  %v265_v31 = vld [vmem:[#allocation5 + $0x14] sm:$0xf0]  ;;  %v263_v32 = vld [vmem:[#allocation5 + $0xc] sm:$0xf]  ;;  %v228_v34 = vor.u32 %v264_v25, %v227_v24  ;;  %v232_v35 = vor.u32 %v262_v28, %v229_v29 }
  0x13   :  { %162 = vmatpush.bf16.msra.mxu2 %v124_v20  ;;  %176 = vmatpush.bf16.msra.mxu3 %v127_v21  ;;  %v237_v33 = vld [vmem:[#allocation5 + $0x18] sm:$0xf0]  ;;  %v236_v36 = vor.u32 %v265_v31, %v235_v30  ;;  %vm112_vm1 = vcmask 293888   ;;  %s363_s0 = smov [#allocation7]   ;;  %s207_s25 = sshll.u32 %s396_s2, 4  ;;  %s208_s25 = int_to_ptr.hbm [resolvable:$true] %s207_s25 }
  0x14   :  { %v240_v37 = vor.u32 %v263_v32, %v237_v33  ;;  %s205_s1 = sshll.u32 %s363_s0, 4  ;;  %s364_s26 = smov 512   ;;  %s206_s1 = int_to_ptr.vmem [resolvable:$true] %s205_s1 }
  0x15   :  { %s365_s27 = smov 32  }
  0x16   :  { %135 = vmatpush.bf16.msra.mxu0 %v244_v22  ;;  %149 = vmatpush.bf16.msra.mxu1 %v248_v23 }
  0x17   :  { %163 = vmatpush.bf16.msra.mxu2 %v252_v26  ;;  %177 = vmatpush.bf16.msra.mxu3 %v256_v27 }
  0x1a   :  { %136 = vmatpush.bf16.msra.mxu0 %v228_v34  ;;  %150 = vmatpush.bf16.msra.mxu1 %v232_v35 }
  0x1b   :  { %164 = vmatpush.bf16.msra.mxu2 %v236_v36  ;;  %178 = vmatpush.bf16.msra.mxu3 %v240_v37 }
  0x1d   :  { %257 = vmatmul.msk.bf16.vlgmr.msra.gmra.mxu0 %vm112_vm1, %v261_v38  ;;  %258 = vmatmul.msk.bf16.vlgmr.msra.gmra.mxu1 %vm112_vm1, %v261_v38 }
  0x1e   :  { %259 = vmatmul.msk.bf16.vlgmr.msra.gmra.mxu2 %vm112_vm1, %v261_v38  ;;  %260 = vmatmul.msk.bf16.vlgmr.msra.gmra.mxu3 %vm112_vm1, %v261_v38 }
  0x9a   :  { %v138_v39 = vpop.f32.mrf.mxu0  ;;  %v152_v40 = vpop.f32.mrf.mxu1 }
  0x9b   :  { %v185_v41 = vmax.f32 %v138_v39, 0.0  ;;  %v186_v42 = vmax.f32 %v152_v40, 0.0 }
  0x9d   :  { %193 = vst [vmem:[#allocation7] sm:$0xff] %v185_v41 }
  0x9e   :  { %194 = vst [vmem:[#allocation7 + $0x8] sm:$0xff] %v186_v42 }
  0xa1   :  { %v166_v43 = vpop.f32.mrf.mxu2  ;;  %v180_v44 = vpop.f32.mrf.mxu3 }
  0xa2   :  { %v187_v45 = vmax.f32 %v166_v43, 0.0  ;;  %v188_v46 = vmax.f32 %v180_v44, 0.0  ;;  %v140_v47 = vpop.f32.mrf.mxu0  ;;  %v154_v48 = vpop.f32.mrf.mxu1 }
  0xa3   :  { %v189_v49 = vmax.f32 %v140_v47, 0.0  ;;  %v190_v50 = vmax.f32 %v154_v48, 0.0 }
  0xa4   :  { %195 = vst [vmem:[#allocation7 + $0x10] sm:$0xff] %v187_v45 }
  0xa5   :  { %196 = vst [vmem:[#allocation7 + $0x18] sm:$0xff] %v188_v46 }
  0xa6   :  { %197 = vst [vmem:[#allocation7 + $0x20] sm:$0xff] %v189_v49 }
  0xa7   :  { %198 = vst [vmem:[#allocation7 + $0x28] sm:$0xff] %v190_v50 }
  0xa9   :  { %v168_v51 = vpop.f32.mrf.mxu2  ;;  %v182_v52 = vpop.f32.mrf.mxu3 }
  0xaa   :  { %v191_v53 = vmax.f32 %v168_v51, 0.0  ;;  %v192_v54 = vmax.f32 %v182_v52, 0.0 }
  0xac   :  { %199 = vst [vmem:[#allocation7 + $0x30] sm:$0xff] %v191_v53 }
  0xad   :  { %200 = vst [vmem:[#allocation7 + $0x38] sm:$0xff] %v192_v54 }
  0xae   :  { %213 = dma.vmem_to_hbm [thread:$0]  %s206_s1, 1024, %s208_s25, [#allocation4], %s364_s26, %s364_s26, %s365_s27  }
  0xaf   :  { %355 = dma.done.wait [#allocation4], 1024  }
  0xb0   :  { %356 = vsyncadd [#allocation4], 4294966272 }
  0xb1   :  { %218 = vsyncpa [#allocation3], 1 }
  0xb2   :  { %219 = vsyncpa [#allocation6], 1 }
  0xb3   :  { %220 = vsyncpa [#allocation4], 1 }

</bundles_post_ra>
